<compile_context>
chip_gen: v6e
topology: v6e:2x2x1
jax: 0.10.0
libtpu: 0.0.40
codegen_flags: <defaults>
</compile_context>

<pallas_src>
import functools

import numpy as np
import jax
import jax.numpy as jnp
from jax.experimental import pallas as pl
from jax.experimental.pallas import tpu as pltpu


def qbn_kernel(x_ref, wb_ref, o_ref, *, per_row, multiplication, m0, rshift, z3, a_bit):
    x = x_ref[...]                                   # (row_tile, lane_tile) int32
    if per_row:                                      # params packed per (n, c) row
        w = wb_ref[:, 0:1]                           # (row_tile, 1) -> lane broadcast
        b = wb_ref[:, 1:2]
    else:                                            # params packed per lane (c*h*w)
        w = wb_ref[0:1, :]                           # (1, lane_tile) -> sublane broadcast
        b = wb_ref[1:2, :]

    # pre == subsum << max(-shift, 0); per-channel fold done on the host (wrapping int32).
    pre = x * w + b

    if not multiplication:
        o_ref[...] = pre
        return

    # ---- hi/lo of the 64-bit product pre * M0 via 16-bit limbs (constant-specialized) ----
    m0_lo = m0 & 0xFFFF          # unsigned low limb  (Python int -> compile-time constant)
    m0_hi = m0 >> 16             # signed high limb   (arithmetic shift, matches int32)

    def mul_c(v, c):             # v * c with trace-time strength reduction; None == 0
        if c == 0:
            return None
        if c == 1:
            return v
        if c == -1:
            return -v
        return v * c

    def add2(a, b_):
        if a is None:
            return b_
        if b_ is None:
            return a
        return a + b_

    u0 = pre & 0xFFFF
    u1 = pre >> 16
    if m0 == 0:
        hi = jnp.zeros_like(pre)
        lo = jnp.zeros_like(pre)
    elif m0_lo == 0:
        # M0 is a multiple of 2^16 (e.g. power-of-two M0): two partial products vanish.
        w1 = mul_c(u0, m0_hi)
        hi = add2(mul_c(u1, m0_hi), w1 >> 16)        # signed high 32 bits of pre*M0
        lo = w1 << 16                                # low 32 bits (bit pattern)
    else:
        w0 = u0 * m0_lo                              # low x low (wraps; low 32 bits exact)
        t = add2(mul_c(u1, m0_lo), (w0 >> 16) & 0xFFFF)
        w1 = add2(mul_c(u0, m0_hi), t & 0xFFFF)
        hi = add2(add2(mul_c(u1, m0_hi), t >> 16), w1 >> 16)
        lo = (w1 << 16) | (w0 & 0xFFFF)

    # ---- multiply_M: mq = (pre*M0 + nudge) >> 31, nudge = 2^30 (p>=0) or 1-2^30 (p<0) ----
    # Fold the nudge into (hi, lo) with one add-with-carry; no 64-bit compare/select chain.
    sign = hi >> 31                                  # 0 / -1 == high word of the nudge
    nudge_lo = jnp.int32(0x40000000) + (sign & jnp.int32(-0x7FFFFFFF))   # 0x40000000 / 0xC0000001
    lo2 = lo + nudge_lo                              # wrapping low-word add
    carry = (pltpu.bitcast(lo2, jnp.uint32) <
             pltpu.bitcast(lo, jnp.uint32)).astype(jnp.int32)
    hi2 = hi + sign + carry
    mq = (hi2 << 1) | pltpu.bitcast(pltpu.bitcast(lo2, jnp.uint32) >> 31, jnp.int32)

    # ---- shifting(mq, rshift): round-to-nearest arithmetic right shift ----
    if rshift > 0:
        # Increment only fires for non-negative products (sign == 0) and equals bit
        # (rshift-1) of mq; bit-exact vs. the mask/rem/threshold reference formulation.
        half = (mq >> (rshift - 1)) & 1
        tot = (mq >> rshift) + (half & ~sign)
    else:
        tot = mq

    out = tot + z3
    # TODO(synk): clamp_matrix source not provided; assuming signed [-2^(a_bit-1), 2^(a_bit-1)-1].
    qmax = (1 << (a_bit - 1)) - 1
    o_ref[...] = jnp.clip(out, -qmax - 1, qmax)


def _round_up(x, m):
    return -(-x // m) * m


def _vmem_limit_bytes():
    """Scoped-VMEM limit: half the physical VMEM (64 MiB on 128 MiB v5e/v6e, 32 MiB on
    64 MiB v7x) so the double-buffered pipeline always has headroom."""
    try:
        cap = int(pltpu.get_tpu_info().vmem_capacity_bytes)
    except Exception:
        cap = 64 << 20
    return max(16 << 20, min(cap // 2, 64 << 20))


def _choose_tiles(rows, lanes, vmem_limit_bytes):
    """Pick (row_tile, lane_tile).  Each tile dim is a multiple of (8, 128) or the full
    extent (ragged boundary blocks are handled by Pallas), sized so the double-buffered
    x/out/param footprint -- including the 128-lane padding of the packed param block --
    stays around 3/4 of the scoped VMEM limit, and split so the grid has >= 2 steps
    whenever the tensor allows it (megacore sharding + DMA/compute overlap)."""
    elem = 4
    target = max(1 << 20, vmem_limit_bytes // 8)     # per x (and per out) block, padded bytes

    # Lane tile first: keep output stores lane-dense (full extent or a multiple of 128).
    if _round_up(lanes, 128) * 8 * elem <= target:
        lane_tile = lanes
    else:
        lane_tile = max(128, (target // (8 * elem)) // 128 * 128)
        if lane_tile >= lanes:
            lane_tile = lanes

    lane_pad = _round_up(min(lane_tile, lanes), 128)
    row_cap = max(8, target // (lane_pad * elem))
    if rows <= row_cap:
        row_tile = rows
    else:
        row_tile = max(8, (row_cap // 8) * 8)

    # Guarantee >= 2 grid steps when there is enough data to split.
    if row_tile >= rows and lane_tile >= lanes:
        if rows >= 16:
            row_tile = _round_up(-(-rows // 2), 8)
        elif lanes >= 256:
            lane_tile = _round_up(-(-lanes // 2), 128)
    return row_tile, lane_tile


def quantized_bn2d(x_nchw, weight, bias, *, z1, z2, z3, M0, shift, a_bit,
                   multiplication=True):
    """x_nchw: (N, C, H, W) int32; weight/bias: (1, C) int32. Returns (N, C, H, W) int32."""
    N, C, H, W = x_nchw.shape
    hw = H * W
    chw = C * hw

    # Host-side per-channel fold (wrapping int32 == bit-exact mod 2^32):
    #   subsum = x*(w - z2) + (b - z1*(w - z2)); fold `subsum << -shift` in when needed.
    lshift = max(-int(shift), 0)
    rshift = max(int(shift), 0)
    w_c = weight.reshape(-1).astype(jnp.int32)
    b_c = bias.reshape(-1).astype(jnp.int32)
    w_eff = w_c - jnp.int32(z2)
    b_eff = b_c - jnp.int32(z1) * w_eff
    if multiplication and lshift > 0:
        w_eff = w_eff << lshift
        b_eff = b_eff << lshift

    # Layout choice: maximize vreg (sublane x lane) utilization of the 2-D view.
    def _util(r, l):
        return (r / _round_up(max(r, 1), 8)) * (l / _round_up(max(l, 1), 128))

    per_row = _util(N * C, hw) >= _util(N, chw)

    if per_row:                      # Mode A: row per (n, c); per-row scalar params
        rows, lanes = N * C, hw
        x2d = x_nchw.reshape(rows, lanes)
        wb = jnp.stack([jnp.tile(w_eff, N), jnp.tile(b_eff, N)], axis=1)      # (rows, 2)
    else:                            # Mode B: row per sample; per-lane param vectors
        rows, lanes = N, chw
        x2d = x_nchw.reshape(rows, lanes)
        wb = jnp.stack([jnp.repeat(w_eff, hw), jnp.repeat(b_eff, hw)], axis=0)  # (2, lanes)

    vmem_limit = _vmem_limit_bytes()
    row_tile, lane_tile = _choose_tiles(rows, lanes, vmem_limit)
    grid = (pl.cdiv(rows, row_tile), pl.cdiv(lanes, lane_tile))

    if per_row:
        wb_spec = pl.BlockSpec((row_tile, 2), lambda i, j: (i, 0))
    else:
        wb_spec = pl.BlockSpec((2, lane_tile), lambda i, j: (0, j))

    kernel = functools.partial(
        qbn_kernel, per_row=bool(per_row), multiplication=bool(multiplication),
        m0=int(np.int32(M0)), rshift=rshift, z3=int(np.int32(z3)), a_bit=int(a_bit))

    out2d = pl.pallas_call(
        kernel,
        out_shape=jax.ShapeDtypeStruct((rows, lanes), jnp.int32),
        grid_spec=pltpu.PrefetchScalarGridSpec(
            num_scalar_prefetch=0,
            grid=grid,
            in_specs=[
                pl.BlockSpec((row_tile, lane_tile), lambda i, j: (i, j)),
                wb_spec,
            ],
            out_specs=pl.BlockSpec((row_tile, lane_tile), lambda i, j: (i, j)),
        ),
        compiler_params=pltpu.CompilerParams(
            # Both grid axes are independent -> shards across v7x's 2 TensorCores.
            dimension_semantics=("parallel", "parallel"),
            vmem_limit_bytes=vmem_limit,
        ),
    )(x2d, wb)

    return out2d.reshape(N, C, H, W)   # zero-copy back to NCHW


def _ref_quantized_bn2d(x, weight, bias, *, z1, z2, z3, M0, shift, a_bit,
                        multiplication=True):
    """NumPy int64 reference mirroring the PyTorch module exactly."""
    x64 = x.astype(np.int64)
    w = weight.astype(np.int64)[0][None, :, None, None]
    b = bias.astype(np.int64)[0][None, :, None, None]
    q2z1 = (weight.astype(np.int64)[0] * z1)[None, :, None, None]
    subsum = (x64 * w - x64 * z2 - q2z1 + z1 * z2 + b).astype(np.int32)
    if not multiplication:
        return subsum
    if shift < 0:
        pre = np.left_shift(subsum, -shift)
        eff = 0
    else:
        pre = subsum
        eff = shift
    p = pre.astype(np.int64) * np.int64(np.int32(M0))
    nudge = np.where(p >= 0, np.int64(1 << 30), np.int64(1 - (1 << 30)))
    mq = (p + nudge) >> 31
    mask = (1 << eff) - 1
    rem = (mq & mask).astype(np.int32)
    maskifneg = np.where(mq < 0, mask, 0)
    thr = ((mask >> 1) + maskifneg).astype(np.int32)
    tot = ((mq >> eff) + np.where(rem > thr, 1, 0)).astype(np.int32)
    out = tot + np.int32(z3)
    qmax = (1 << (a_bit - 1)) - 1
    qmin = -qmax - 1
    return np.clip(out, qmin, qmax).astype(np.int32)


if __name__ == "__main__":
    key = jax.random.PRNGKey(0)

    def run_case(shape, params, k):
        N, C, H, W = shape
        k1, k2, k3 = jax.random.split(k, 3)
        x = jax.random.randint(k1, shape, -128, 128, dtype=jnp.int32)
        weight = jax.random.randint(k2, (1, C), -64, 64, dtype=jnp.int32)
        bias = jax.random.randint(k3, (1, C), -512, 512, dtype=jnp.int32)
        out = quantized_bn2d(x, weight, bias, **params)
        out = jax.block_until_ready(out)
        ref = _ref_quantized_bn2d(np.asarray(x), np.asarray(weight), np.asarray(bias), **params)
        np.testing.assert_array_equal(np.asarray(out), ref)

    cases = [
        # (shape, params)
        # Lane-dense Mode A, right-shift path, general M0 limbs.
        ((2, 4, 16, 16), dict(z1=3, z2=-2, z3=7, M0=1518500250, shift=5, a_bit=8, multiplication=True)),
        # Left-shift fold (shift < 0) + m0_lo == 0 constant specialization.
        ((2, 4, 16, 16), dict(z1=3, z2=-2, z3=7, M0=1073741824, shift=-2, a_bit=8, multiplication=True)),
        # Subsum-only path (multiplication=False).
        ((2, 4, 16, 16), dict(z1=3, z2=-2, z3=7, M0=0, shift=0, a_bit=8, multiplication=False)),
        # 7x7 feature map: lane-dense (N, C*H*W) Mode B layout, ragged lane block, a_bit=4.
        ((8, 6, 7, 7),   dict(z1=-1, z2=4, z3=-3, M0=1200000003, shift=3, a_bit=4, multiplication=True)),
        # Non-multiple-of-8 row count (15) + non-multiple-of-128 lanes + negative M0.
        ((3, 5, 14, 14), dict(z1=2, z2=1, z3=0, M0=-1518500250, shift=6, a_bit=8, multiplication=True)),
        # Bigger tensor: exercises the >=2-grid-step (megacore) split along rows.
        ((4, 32, 32, 32), dict(z1=0, z2=3, z3=-5, M0=1789569707, shift=7, a_bit=8, multiplication=True)),
    ]
    for shape, params in cases:
        key, sub = jax.random.split(key)
        run_case(shape, params, sub)

    print("KERNEL_OK")
</pallas_src>

<mosaic_0001>
module attributes {stable_mosaic.version = 11 : i64} {
  func.func @qbn_kernel(%arg0: i32, %arg1: i32, %arg2: memref<8x128xi32, #tpu.memory_space<vmem>>, %arg3: memref<8x2xi32, #tpu.memory_space<vmem>>, %arg4: memref<8x128xi32, #tpu.memory_space<vmem>>) attributes {dimension_semantics = [#tpu.dimension_semantics<parallel>, #tpu.dimension_semantics<parallel>], iteration_bounds = array<i64: 1, 2>, scalar_prefetch = 0 : i64, scratch_operands = 0 : i64, tpu.core_type = #tpu.core_type<tc>, window_params = [{transform_indices = @transform_0, window_bounds = array<i64: 8, 128>}, {transform_indices = @transform_1, window_bounds = array<i64: 8, 2>}, {transform_indices = @transform_2, window_bounds = array<i64: 8, 128>}]} {
    %c0 = arith.constant 0 : index
    %c0_0 = arith.constant 0 : index
    %0 = vector.load %arg2[%c0, %c0_0] : memref<8x128xi32, #tpu.memory_space<vmem>>, vector<8x128xi32>
    %c0_1 = arith.constant 0 : index
    %c0_2 = arith.constant 0 : index
    %1 = vector.load %arg3[%c0_1, %c0_2] : memref<8x2xi32, #tpu.memory_space<vmem>>, vector<8x1xi32>
    %c0_3 = arith.constant 0 : index
    %c1 = arith.constant 1 : index
    %2 = vector.load %arg3[%c0_3, %c1] : memref<8x2xi32, #tpu.memory_space<vmem>>, vector<8x1xi32>
    %3 = vector.broadcast %1 : vector<8x1xi32> to vector<8x128xi32>
    %4 = arith.muli %0, %3 : vector<8x128xi32>
    %5 = vector.broadcast %2 : vector<8x1xi32> to vector<8x128xi32>
    %6 = arith.addi %4, %5 : vector<8x128xi32>
    %c65535_i32 = arith.constant 65535 : i32
    %7 = vector.broadcast %c65535_i32 : i32 to vector<8x128xi32>
    %8 = arith.andi %6, %7 : vector<8x128xi32>
    %c16_i32 = arith.constant 16 : i32
    %9 = vector.broadcast %c16_i32 : i32 to vector<8x128xi32>
    %10 = arith.shrsi %6, %9 : vector<8x128xi32>
    %c31130_i32 = arith.constant 31130 : i32
    %11 = vector.broadcast %c31130_i32 : i32 to vector<8x128xi32>
    %12 = arith.muli %8, %11 : vector<8x128xi32>
    %c31130_i32_4 = arith.constant 31130 : i32
    %13 = vector.broadcast %c31130_i32_4 : i32 to vector<8x128xi32>
    %14 = arith.muli %10, %13 : vector<8x128xi32>
    %c16_i32_5 = arith.constant 16 : i32
    %15 = vector.broadcast %c16_i32_5 : i32 to vector<8x128xi32>
    %16 = arith.shrsi %12, %15 : vector<8x128xi32>
    %c65535_i32_6 = arith.constant 65535 : i32
    %17 = vector.broadcast %c65535_i32_6 : i32 to vector<8x128xi32>
    %18 = arith.andi %16, %17 : vector<8x128xi32>
    %19 = arith.addi %14, %18 : vector<8x128xi32>
    %c23170_i32 = arith.constant 23170 : i32
    %20 = vector.broadcast %c23170_i32 : i32 to vector<8x128xi32>
    %21 = arith.muli %8, %20 : vector<8x128xi32>
    %c65535_i32_7 = arith.constant 65535 : i32
    %22 = vector.broadcast %c65535_i32_7 : i32 to vector<8x128xi32>
    %23 = arith.andi %19, %22 : vector<8x128xi32>
    %24 = arith.addi %21, %23 : vector<8x128xi32>
    %c23170_i32_8 = arith.constant 23170 : i32
    %25 = vector.broadcast %c23170_i32_8 : i32 to vector<8x128xi32>
    %26 = arith.muli %10, %25 : vector<8x128xi32>
    %c16_i32_9 = arith.constant 16 : i32
    %27 = vector.broadcast %c16_i32_9 : i32 to vector<8x128xi32>
    %28 = arith.shrsi %19, %27 : vector<8x128xi32>
    %29 = arith.addi %26, %28 : vector<8x128xi32>
    %c16_i32_10 = arith.constant 16 : i32
    %30 = vector.broadcast %c16_i32_10 : i32 to vector<8x128xi32>
    %31 = arith.shrsi %24, %30 : vector<8x128xi32>
    %32 = arith.addi %29, %31 : vector<8x128xi32>
    %c16_i32_11 = arith.constant 16 : i32
    %33 = vector.broadcast %c16_i32_11 : i32 to vector<8x128xi32>
    %34 = arith.shli %24, %33 : vector<8x128xi32>
    %c65535_i32_12 = arith.constant 65535 : i32
    %35 = vector.broadcast %c65535_i32_12 : i32 to vector<8x128xi32>
    %36 = arith.andi %12, %35 : vector<8x128xi32>
    %37 = arith.ori %34, %36 : vector<8x128xi32>
    %c31_i32 = arith.constant 31 : i32
    %38 = vector.broadcast %c31_i32 : i32 to vector<8x128xi32>
    %39 = arith.shrsi %32, %38 : vector<8x128xi32>
    %c-2147483647_i32 = arith.constant -2147483647 : i32
    %40 = vector.broadcast %c-2147483647_i32 : i32 to vector<8x128xi32>
    %41 = arith.andi %39, %40 : vector<8x128xi32>
    %c1073741824_i32 = arith.constant 1073741824 : i32
    %42 = vector.broadcast %c1073741824_i32 : i32 to vector<8x128xi32>
    %43 = arith.addi %42, %41 : vector<8x128xi32>
    %44 = arith.addi %37, %43 : vector<8x128xi32>
    %45 = tpu.bitcast %44 : vector<8x128xi32> -> vector<8x128xi32>
    %46 = tpu.bitcast %37 : vector<8x128xi32> -> vector<8x128xi32>
    %47 = arith.cmpi ult, %45, %46 : vector<8x128xi32>
    %48 = arith.extui %47 : vector<8x128xi1> to vector<8x128xi32>
    %49 = arith.addi %32, %39 : vector<8x128xi32>
    %50 = arith.addi %49, %48 : vector<8x128xi32>
    %c1_i32 = arith.constant 1 : i32
    %51 = vector.broadcast %c1_i32 : i32 to vector<8x128xi32>
    %52 = arith.shli %50, %51 : vector<8x128xi32>
    %53 = tpu.bitcast %44 : vector<8x128xi32> -> vector<8x128xi32>
    %c31_i32_13 = arith.constant 31 : i32
    %54 = vector.broadcast %c31_i32_13 : i32 to vector<8x128xi32>
    %55 = arith.shrui %53, %54 : vector<8x128xi32>
    %56 = tpu.bitcast %55 : vector<8x128xi32> -> vector<8x128xi32>
    %57 = arith.ori %52, %56 : vector<8x128xi32>
    %c4_i32 = arith.constant 4 : i32
    %58 = vector.broadcast %c4_i32 : i32 to vector<8x128xi32>
    %59 = arith.shrsi %57, %58 : vector<8x128xi32>
    %c1_i32_14 = arith.constant 1 : i32
    %60 = vector.broadcast %c1_i32_14 : i32 to vector<8x128xi32>
    %61 = arith.andi %59, %60 : vector<8x128xi32>
    %c5_i32 = arith.constant 5 : i32
    %62 = vector.broadcast %c5_i32 : i32 to vector<8x128xi32>
    %63 = arith.shrsi %57, %62 : vector<8x128xi32>
    %cst = arith.constant dense<-1> : vector<8x128xi32>
    %64 = arith.xori %39, %cst : vector<8x128xi32>
    %65 = arith.andi %61, %64 : vector<8x128xi32>
    %66 = arith.addi %63, %65 : vector<8x128xi32>
    %c7_i32 = arith.constant 7 : i32
    %67 = vector.broadcast %c7_i32 : i32 to vector<8x128xi32>
    %68 = arith.addi %66, %67 : vector<8x128xi32>
    %c-128_i32 = arith.constant -128 : i32
    %c127_i32 = arith.constant 127 : i32
    %69 = vector.broadcast %c-128_i32 : i32 to vector<8x128xi32>
    %70 = arith.maxsi %69, %68 : vector<8x128xi32>
    %71 = vector.broadcast %c127_i32 : i32 to vector<8x128xi32>
    %72 = arith.minsi %71, %70 : vector<8x128xi32>
    %c0_15 = arith.constant 0 : index
    %c0_16 = arith.constant 0 : index
    %73 = vector.load %arg4[%c0_15, %c0_16] : memref<8x128xi32, #tpu.memory_space<vmem>>, vector<8x128xi32>
    tpu.vector_store %arg4[%c0_15, %c0_16], %72 {strides = array<i32>} : memref<8x128xi32, #tpu.memory_space<vmem>>, vector<8x128xi32>,
    return
  }
  func.func @transform_0(%arg0: i32, %arg1: i32) -> (i32, i32) {
    %c0_i32 = arith.constant 0 : i32
    return %arg0, %arg1 : i32, i32
  }
  func.func @transform_1(%arg0: i32, %arg1: i32) -> (i32, i32) {
    %c0_i32 = arith.constant 0 : i32
    %c0_i32_0 = arith.constant 0 : i32
    return %arg0, %c0_i32 : i32, i32
  }
  func.func @transform_2(%arg0: i32, %arg1: i32) -> (i32, i32) {
    %c0_i32 = arith.constant 0 : i32
    return %arg0, %arg1 : i32, i32
  }
}

</mosaic_0001>

<bundles_post_ra>
// kernel: tpu_custom_call.1
= control target key start
LH: loop header
LB: loop body
LE: loop exit
PB: predicated region body
PF: predicated region fallthrough
CT: control target
= control target key end

     0   :  { %7 = vsyncpa [#allocation3], 0  ;;  %s715_s0 = inlined_call_operand.hbm [shape: s32[8,256], index: 0, kind: input, shape index: {}]   ;;  %s716_s1 = inlined_call_operand.vmem [shape: s32[8,2], index: 1, kind: input, shape index: {}]   ;;  %s717_s2 = inlined_call_operand.hbm [shape: s32[8,256], index: 2, kind: output, shape index: {}]  }
   0x1   :  { %9 = vsyncpa [#allocation3 + $0x1], 0 }
   0x2   :  { %10 = vsyncpa [#allocation4], 0 }
   0x3   :  { %12 = vsyncpa [#allocation4 + $0x1], 0  ;;  %s568_s9 = smov 0   ;;  %s570_s10 = smov 0  }
   0x4   :  { %s572_s11 = smov 0   ;;  %s574_s12 = smov 0  }
   0x5   :  { %s576_s13 = smov 0   ;;  %s578_s14 = smov 0  }
   0x6 LB: > { %s358_s15 = sadd.s32 4294967295, %s547_s14   ;;  %s359_s16 = sadd.s32 4294967294, %s547_s14   ;;  %s547_s14 = sphi %s578_s14, %s18_s14   ;;  %s543_s13 = sphi %s576_s13, %s729_s13   ;;  %s539_s12 = sphi %s574_s12, %s728_s12   ;;  %s535_s11 = sphi %s572_s11, %s727_s11   ;;  %s531_s10 = sphi %s570_s10, %s726_s10   ;;  %s527_s9 = sphi %s568_s9, %s725_s9  }
   0x7   : > { %s27_s17 = sadd.s32 1, %s543_s13  ;;  %s39_s18 = sadd.s32 1, %s535_s11 }
   0x8   : > { %p28_p0 = scmp.ge.s32.totalorder %s27_s17, 2  ;;  %p46_p1 = scmp.ne.s32.totalorder %s535_s11, %s531_s10 }
   0x9   : > { %p47_p2 = scmp.eq.s32.totalorder %s547_s14, 0  ;;  %p52_p3 = scmp.ne.s32.totalorder %s531_s10, %s527_s9 }
   0xa   : > { %s731_s17 = smov (%p28_p0, %s27_s17), 0  ;;  %p53_p5 = scmp.eq.s32.totalorder %s358_s15, 0 }
   0xb   : > { %p609_p4 = por %p47_p2, %p46_p1  ;;  %s35_s20 = ssub.s32 %s543_s13, %s731_s17 }
   0xc   : > { %p104_p6 = scmp.eq.s32.totalorder %s358_s15, 1  ;;  %p37_p7 = scmp.eq.s32.totalorder %s35_s20, 0 }
   0xd   : > { %p615_p8 = por %p53_p5, %p52_p3  ;;  %p110_p10 = scmp.eq.s32.totalorder %s359_s16, 1 }
   0xe   : > { %p619_p9 = por %p104_p6, %p46_p1  ;;  %p385_p13 = scmp.lt.s32.totalorder %s547_s14, 2 }
   0xf   : > { %s624_s23 = scalar_select %p37_p7, %s535_s11, %s39_s18  }
  0x10   : > { %p626_p11 = por %p110_p10, %p52_p3  ;;  %s137_s25 = sand.u32 1, %s535_s11  }
  0x11   : > { %s363_s26 = sshll.u32 %s137_s25, 3  ;;  %s364_s27 = sshll.u32 %s543_s13, 7 }
  0x12   : > { %s721_s24 = scalar_select %p626_p11, 1, 0 }
  0x13   : > { %s148_s30 = scalar_lea.hbm %s715_s0, %s364_s27  ;;  %s141_s3 = scalar_lea.vmem [#allocation2], %s363_s26 }
  0x14   : > { %s150_s4 = sshll.u32 %s141_s3, 4  ;;  %p639_p0 = pnand %p385_p13, %p609_p4  ;;  %s151_s4 = int_to_ptr.vmem [resolvable:$true] %s150_s4 }
  0x15   : > { %p365_p1 = scmp.ge.s32.totalorder %s547_s14, 1  ;;  %p155_p2 = scmp.lt.s32.totalorder %s547_s14, 3 }
  0x16   : > { %s138_s6 = scalar_lea.sflag [#allocation3], %s137_s25  ;;  %p441_p3 = pneg %p639_p0 }
  0x17   : > { %s452_s7 = scalar_lea.vmem %s151_s4, 128  ;;  %s549_s8 = smov [#allocation2]  }
  0x18   : > { %p453_p5 = scmp.ne.s32.totalorder %s151_s4, %s452_s7  ;;  %s457_s15 = sshll.u32 %s549_s8, 4  ;;  %s458_s15 = int_to_ptr.vmem [resolvable:$false] %s457_s15 }
  0x19   : > { %s459_s16 = scalar_lea.vmem %s458_s15, 256  ;;  %p460_p10 = scmp.lt.s32.totalorder %s151_s4, %s458_s15 }
  0x1a   : > { %p455_p6 = pnand %p453_p5, %p441_p3  ;;  %p461_p12 = scmp.lt.s32.totalorder %s459_s16, %s452_s7 }
  0x1c   : > { %p456_p7 = pneg %p455_p6  ;;  %p462_p4 = por %p461_p12, %p460_p10 }
  0x1e   : > { %p463_p13 = pnand %p462_p4, %p456_p7 }
  0x20   : > { %466 = shalt.err (!%p463_p13)
}
  0x21   : > { %380 = dma.hbm_to_vmem [thread:$0]  (!%p639_p0), %s148_s30, 128, %s151_s4, %s138_s6  }
  0x22   : > { %p156_p11 = pnand %p365_p1, %p155_p2 }
  0x23   : > { %s654_s18 = sand.u32 (!%p156_p11), 1, %s531_s10  }
  0x24   : > { %159 = sbr.rel (%p156_p11) target bundleno = 234 (0xea), region = 28  ;;  %s366_s19 = sshll.u32 (!%p156_p11), %s654_s18, 3 }
  0x25   : > { %s162_s20 = scalar_lea.sflag (!%p156_p11), [#allocation3], %s654_s18  ;;  %s165_s25 = scalar_lea.vmem (!%p156_p11), [#allocation2], %s366_s19 }
  0x29   : > { %518 = dma.done.wait (%p615_p8), %s162_s20, 128  }
  0x2a   : > { %520 = vsyncadd (%p615_p8), %s162_s20, 4294967168  ;;  %v550_v0 = vmov 0   ;;  %v195_v1 = vld [vmem:[%s716_s1] sm:$0xff]  ;;  %v551_v2 = vmov 1   ;;  %s370_s21 = sshll.u32 %s539_s12, 7  ;;  %s189_s28 = scalar_lea.vmem [#allocation5], %s366_s19 }
  0x2b   : > { %437 = vset.pattern.permute.xlu0 %v550_v0  ;;  %v194_v4 = vld [vmem:[%s165_s25] sm:$0xff]  ;;  %s261_s29 = sshll.u32 %s189_s28, 4  ;;  %s673_s4 = scalar_lea.hbm %s717_s2, %s370_s21  ;;  %s262_s29 = int_to_ptr.vmem [resolvable:$true] %s261_s29 }
  0x2c   : > { %197 = vperm.xlu0 %437, %v195_v1   ;;  %s246_s5 = scalar_lea.sflag [#allocation4], %s654_s18  ;;  %s467_s6 = scalar_lea.vmem %s262_s29, 128 }
  0x2d   : > { %p468_p8 = scmp.ne.s32.totalorder %s262_s29, %s467_s6  ;;  %s552_s12 = smov [#allocation5]  }
  0x2e   : > { %s471_s7 = sshll.u32 %s552_s12, 4  ;;  %s472_s7 = int_to_ptr.vmem [resolvable:$false] %s471_s7 }
  0x2f   : > { %p469_p11 = pnand %p468_p8, %p619_p9  ;;  %s473_s8 = scalar_lea.vmem %s472_s7, 256 }
  0x30   : > { %438 = vset.pattern.permute.xlu0 %v551_v2  ;;  %p474_p0 = scmp.lt.s32.totalorder %s262_s29, %s472_s7  ;;  %p475_p1 = scmp.lt.s32.totalorder %s473_s8, %s467_s6 }
  0x31   : > { %201 = vperm.xlu0 %438, %v195_v1   ;;  %p470_p12 = pneg %p469_p11 }
  0x32   : > { %p476_p2 = por %p475_p1, %p474_p0 }
  0x34   : > { %p477_p3 = pnand %p476_p2, %p470_p12 }
  0xa7   : > { %v198_v3 = vpop.permute.xlu0 %197 }
  0xa8   : > { %v199_v5 = vmul.u32 %v198_v3, %v194_v4 }
  0xac   : > { %v202_v6 = vpop.permute.xlu0 %201 }
  0xad   : > { %v203_v7 = vadd.s32 %v202_v6, %v199_v5 }
  0xaf   : > { %v204_v8 = vand.u32 65535, %v203_v7  ;;  %v205_v9 = vshra.s32 %v203_v7, 16 }
  0xb1   : > { %v206_v10 = vmul.u32 31130, %v204_v8  ;;  %v207_v11 = vmul.u32 31130, %v205_v9 }
  0xb2   : > { %v211_v14 = vmul.u32 23170, %v204_v8  ;;  %v214_v18 = vmul.u32 23170, %v205_v9 }
  0xb3   : > { %v368_v12 = vshrl.u32 %v206_v10, 16  ;;  %v220_v24 = vand.u32 65535, %v206_v10 }
  0xb5   : > { %v210_v13 = vadd.s32 %v368_v12, %v207_v11 }
  0xb7   : > { %v212_v15 = vand.u32 65535, %v210_v13  ;;  %v215_v16 = vshra.s32 %v210_v13, 16 }
  0xb9   : > { %v213_v17 = vadd.s32 %v212_v15, %v211_v14  ;;  %v216_v19 = vadd.s32 %v215_v16, %v214_v18 }
  0xbb   : > { %v217_v20 = vshra.s32 %v213_v17, 16  ;;  %v219_v22 = vshll.u32 %v213_v17, 16 }
  0xbd   : > { %v218_v21 = vadd.s32 %v217_v20, %v216_v19  ;;  %v221_v26 = vor.u32 %v220_v24, %v219_v22 }
  0xbf   : > { %v222_v23 = vshra.s32 %v218_v21, 31 }
  0xc1   : > { %v223_v25 = vand.u32 2147483649, %v222_v23  ;;  %v228_v29 = vadd.s32 %v222_v23, %v218_v21  ;;  %v236_v36 = vxor.u32 4294967295, %v222_v23 }
  0xc3   : > { %v224_v27 = vadd.s32 1073741824, %v223_v25 }
  0xc5   : > { %v225_v28 = vadd.s32 %v224_v27, %v221_v26 }
  0xc7   : > { %vm226_vm0 = vcmp.lt.u32.totalorder %v225_v28, %v221_v26  ;;  %v231_v33 = vshrl.u32 %v225_v28, 31 }
  0xc8   : > { %v227_v30 = vsel %vm226_vm0, 1, %v550_v0 }
  0xc9   : > { %v229_v31 = vadd.s32 %v228_v29, %v227_v30 }
  0xcb   : > { %v230_v32 = vshll.u32 %v229_v31, 1 }
  0xcd   : > { %v232_v34 = vor.u32 %v231_v33, %v230_v32 }
  0xcf   : > { %v233_v35 = vshra.s32 %v232_v34, 4  ;;  %v235_v38 = vshra.s32 %v232_v34, 5 }
  0xd1   : > { %v234_v37 = vand.u32 1, %v233_v35 }
  0xd3   : > { %v237_v39 = vand.u32 %v236_v36, %v234_v37 }
  0xd5   : > { %v238_v40 = vadd.s32 %v237_v39, %v235_v38 }
  0xd7   : > { %v239_v41 = vadd.s32 7, %v238_v40 }
  0xd9   : > { %vm240_vm1 = vcmp.gt.s32.totalorder %v239_v41, 4294967168 }
  0xda   : > { %v241_v42 = vsel %vm240_vm1, %v239_v41, 4294967168 }
  0xdb   : > { %vm242_vm2 = vcmp.lt.s32.totalorder %v241_v42, 127 }
  0xdc   : > { %v243_v43 = vsel %vm242_vm2, %v241_v42, 127 }
  0xdd   : > { %244 = vst [vmem:[%s189_s28] sm:$0xff] %v243_v43 }
  0xde   : > { %480 = shalt.err (!%p477_p3)
}
  0xdf   : > { %s481_s15 = scalar_lea.hbm %s673_s4, 128  ;;  %s485_s19 = scalar_lea.hbm %s717_s2, 256 }
  0xe0   : > { %p482_p5 = scmp.ne.s32.totalorder %s673_s4, %s481_s15  ;;  %p486_p10 = scmp.lt.s32.totalorder %s673_s4, %s717_s2 }
  0xe1   : > { %p487_p4 = scmp.lt.s32.totalorder %s485_s19, %s481_s15 }
  0xe2   : > { %p483_p6 = pnand %p482_p5, %p619_p9 }
  0xe3   : > { %p488_p13 = por %p487_p4, %p486_p10 }
  0xe4   : > { %p484_p7 = pneg %p483_p6 }
  0xe6   : > { %p489_p8 = pnand %p488_p13, %p484_p7 }
  0xe8   : > { %492 = shalt.err (!%p489_p8)
}
  0xe9   : > { %375 = dma.vmem_to_hbm [thread:$0]  (%p619_p9), %s262_s29, 128, %s673_s4, %s246_s5  }
  0xea PF: > { %s273_s26 = sand.u32 1, %s527_s9   ;;  %p723_p11 = scmp.ne.s32.totalorder %s721_s24, 0 }
  0xeb   : > { %p724_p12 = scmp.ge.s32.totalorder %s547_s14, 2  ;;  %s274_s27 = scalar_lea.sflag [#allocation4], %s273_s26 }
  0xed   : > { %p382_p0 = pnand %p724_p12, %p723_p11 }
  0xef   : > { %p383_p1 = pneg %p382_p0 }
  0xf1   : > { %522 = dma.done.wait (%p383_p1), %s274_s27, 128  }
  0xf2   : > { %524 = vsyncadd (%p383_p1), %s274_s27, 4294967168  ;;  %s18_s14 = sadd.s32 1, %s547_s14   ;;  %s725_s9 = smov %s531_s10 }
  0xf3   : > { %p15_p2 = scmp.ge.s32.totalorder %s18_s14, 4   ;;  %s726_s10 = smov %s535_s11 }
  0xf4   : > { %s727_s11 = smov %s624_s23  ;;  %s728_s12 = smov %s543_s13 }
  0xf5   : > { %s729_s13 = smov %s731_s17  ;;  %17 = sbr.rel (!%p15_p2) target bundleno = 6 (0x6), region = 76 }
  0xfa   :  { %279 = vsyncpa [#allocation3], 1 }
  0xfb   :  { %281 = vsyncpa [#allocation3 + $0x1], 1 }
  0xfc   :  { %282 = vsyncpa [#allocation4], 1 }
  0xfd   :  { %284 = vsyncpa [#allocation4 + $0x1], 1 }

</bundles_post_ra>
